<compile_context>
chip_gen: v7x
topology: tpu7x:2x2x1
jax: 0.10.0
libtpu: 0.0.40
codegen_flags: <defaults>
</compile_context>

<pallas_src>
import functools

import jax
import jax.numpy as jnp
from jax.experimental import pallas as pl
from jax.experimental.pallas import tpu as pltpu


_LANE = 128                               # full lane width -> contiguous, unmasked tiles
_SINGLE_BLOCK_BYTES = 1 * 1024 * 1024     # slabs below this stay a single full-dim block


@functools.lru_cache(maxsize=None)
def _chip_block_config():
    """Returns (block_bytes, vmem_limit_bytes or None), generation-aware."""
    kind = ""
    try:
        kind = jax.devices()[0].device_kind.lower()
    except Exception:  # pragma: no cover - defensive; fall back to safe defaults
        pass
    if "v7" in kind:
        # v7x: ~3.2 TB/s HBM -> big blocks to amortize ~0.35 us/step overhead.
        # 8 MiB x 2 buffers x (in+out) = 32 MiB == default scoped limit, so
        # raise the limit explicitly but stay well under 64 MiB physical VMEM.
        return 8 * 1024 * 1024, 48 * 1024 * 1024
    if "v6" in kind:
        # v6e: 4 MiB blocks -> 16 MiB total, under the 32 MiB default limit.
        return 4 * 1024 * 1024, None
    # v5e (~820 GB/s) and unknown chips: 2 MiB blocks already make the fixed
    # per-step overhead negligible and keep total VMEM at 8 MiB (< 16 MiB
    # default scoped limit).
    return 2 * 1024 * 1024, None


def _gmof_kernel(x_ref, o_ref, *, rho_sq, approx_recip):
    # x_ref / o_ref: (tile_rows, 128) VMEM tiles in the input dtype.
    x = x_ref[...].astype(jnp.float32)    # upcast in-register (no-op for f32)
    sq = x * x
    denom = sq + rho_sq
    if approx_recip:
        # EUP vrcp: fine for 16-bit outputs (error << bf16/f16 resolution).
        out = sq * pl.reciprocal(denom, approx=True)
    else:
        out = sq / denom
    o_ref[...] = out.astype(o_ref.dtype)


def _gmof_bulk(x2d, rho_sq):
    """Run the kernel over a (rows, 128) slab (rows arbitrary)."""
    rows, lane = x2d.shape
    dtype = x2d.dtype
    itemsize = jnp.dtype(dtype).itemsize
    # Sublane packing: 8 rows for 4-byte, 16 for 2-byte, 32 for 1-byte dtypes.
    pack = 8 * max(1, 4 // itemsize)
    block_bytes, vmem_limit = _chip_block_config()

    # Largest tile that keeps one block at/under the generation target,
    # rounded down to the sublane packing.
    max_tile_rows = max(pack, (block_bytes // (lane * itemsize)) // pack * pack)
    single_block_rows = max(pack, _SINGLE_BLOCK_BYTES // (lane * itemsize))

    if rows <= single_block_rows:
        # Tiny/medium slab: one full-dim block (always a legal block shape).
        tile_rows = rows
    else:
        # Guarantee >= 2 grid steps so the "parallel" axis can shard across
        # both TensorCores on v7x and the pipeline overlaps DMA with compute.
        # (pltpu.CORE_PARALLEL is a possible sweep here; "parallel" is the
        # portable choice.)
        half_rows = -(-rows // 2)                   # cdiv(rows, 2)
        half_rows = -(-half_rows // pack) * pack    # round up to sublane packing
        tile_rows = min(max_tile_rows, half_rows)
    grid = (pl.cdiv(rows, tile_rows),)

    approx_recip = itemsize <= 2   # bf16 / f16 outputs only

    return pl.pallas_call(
        functools.partial(_gmof_kernel, rho_sq=rho_sq, approx_recip=approx_recip),
        out_shape=jax.ShapeDtypeStruct((rows, lane), dtype),
        grid_spec=pl.GridSpec(
            grid=grid,
            in_specs=[pl.BlockSpec((tile_rows, lane), lambda i: (i, 0))],
            out_specs=pl.BlockSpec((tile_rows, lane), lambda i: (i, 0)),
        ),
        compiler_params=pltpu.CompilerParams(
            dimension_semantics=("parallel",),
            vmem_limit_bytes=vmem_limit,
        ),
    )(x2d)


def gmof_unscaled(residual: jax.Array, rho: float = 1.0) -> jax.Array:
    """GMoF_unscaled forward pass. Elementwise, any shape, any float dtype."""
    orig_shape = residual.shape
    # torch.div on integer inputs returns a float tensor; match by going to f32.
    if jnp.issubdtype(residual.dtype, jnp.floating):
        x = residual
    else:
        x = residual.astype(jnp.float32)
    out_dtype = x.dtype
    rho_sq = float(rho) ** 2

    x_flat = x.reshape(-1)            # row-major flatten: free
    n = x_flat.shape[0]
    if n == 0:
        return jnp.zeros(orig_shape, out_dtype)

    n_bulk = (n // _LANE) * _LANE     # 128-aligned bulk handled by the kernel
    tail = n - n_bulk                 # < 128 leftover elements handled by plain jnp

    parts = []
    if n_bulk > 0:
        x2d = x_flat[:n_bulk].reshape(n_bulk // _LANE, _LANE)
        parts.append(_gmof_bulk(x2d, rho_sq).reshape(-1))
    if tail > 0:
        t = x_flat[n_bulk:].astype(jnp.float32)
        sq = t * t
        parts.append((sq / (sq + rho_sq)).astype(out_dtype))

    # See header comment: for ragged n this concatenate is traffic-equivalent
    # to any padded-output scheme; 128-aligned n skips it entirely.
    out_flat = parts[0] if len(parts) == 1 else jnp.concatenate(parts)
    return out_flat.reshape(orig_shape)


def _ref(residual, rho):
    r = residual.astype(jnp.float32)
    sq = r * r
    return (sq / (sq + float(rho) ** 2)).astype(residual.dtype
                                                if jnp.issubdtype(residual.dtype, jnp.floating)
                                                else jnp.float32)


if __name__ == "__main__":
    rho = 1.0

    # Primary check: NCHW-like residual tensor (128-aligned -> pure kernel path).
    residual = jax.random.normal(jax.random.PRNGKey(0), (2, 4, 16, 16), dtype=jnp.float32)
    out = jax.block_until_ready(gmof_unscaled(residual, rho=rho))
    assert out.shape == residual.shape and out.dtype == residual.dtype
    assert jnp.allclose(out, _ref(residual, rho), atol=1e-6, rtol=1e-6), "f32 mismatch"

    # Rows not a multiple of 8 (single full-dim block).
    residual2 = jax.random.normal(jax.random.PRNGKey(1), (2, 4, 16, 20), dtype=jnp.float32)
    out2 = jax.block_until_ready(gmof_unscaled(residual2, rho=rho))
    assert jnp.allclose(out2, _ref(residual2, rho), atol=1e-6, rtol=1e-6), "non-8-row mismatch"

    # bf16 input: in-kernel cast + EUP approx reciprocal.
    residual3 = jax.random.normal(jax.random.PRNGKey(2), (4, 1024), dtype=jnp.bfloat16)
    out3 = jax.block_until_ready(gmof_unscaled(residual3, rho=rho))
    assert out3.dtype == jnp.bfloat16
    assert jnp.allclose(out3.astype(jnp.float32), _ref(residual3, rho).astype(jnp.float32),
                        atol=1e-2, rtol=1e-2), "bf16 mismatch"

    # Multi-block path (>= 2 grid steps, partial last block along sublanes).
    residual4 = jax.random.normal(jax.random.PRNGKey(3), (2626, 128), dtype=jnp.float32)
    out4 = jax.block_until_ready(gmof_unscaled(residual4, rho=rho))
    assert jnp.allclose(out4, _ref(residual4, rho), atol=1e-6, rtol=1e-6), "multi-block mismatch"

    # Ragged tail path (n % 128 != 0): bulk kernel + jnp tail.
    residual5 = jax.random.normal(jax.random.PRNGKey(4), (3, 7, 19), dtype=jnp.float32)
    out5 = jax.block_until_ready(gmof_unscaled(residual5, rho=rho))
    assert jnp.allclose(out5, _ref(residual5, rho), atol=1e-6, rtol=1e-6), "ragged-tail mismatch"

    print("KERNEL_OK")
</pallas_src>

<mosaic_0001>
module attributes {stable_mosaic.version = 11 : i64} {
  func.func @_gmof_kernel(%arg0: i32, %arg1: memref<16x128xf32, #tpu.memory_space<vmem>>, %arg2: memref<16x128xf32, #tpu.memory_space<vmem>>) attributes {dimension_semantics = [#tpu.dimension_semantics<parallel>], iteration_bounds = array<i64: 1>, scalar_prefetch = 0 : i64, scratch_operands = 0 : i64, tpu.core_type = #tpu.core_type<tc>, window_params = [{transform_indices = @transform_0, window_bounds = array<i64: 16, 128>}, {transform_indices = @transform_1, window_bounds = array<i64: 16, 128>}]} {
    %c0 = arith.constant 0 : index
    %c0_0 = arith.constant 0 : index
    %0 = vector.load %arg1[%c0, %c0_0] : memref<16x128xf32, #tpu.memory_space<vmem>>, vector<16x128xf32>
    %1 = arith.mulf %0, %0 : vector<16x128xf32>
    %cst = arith.constant 1.000000e+00 : f32
    %2 = vector.broadcast %cst : f32 to vector<16x128xf32>
    %3 = arith.addf %1, %2 : vector<16x128xf32>
    %4 = arith.divf %1, %3 : vector<16x128xf32>
    %c0_1 = arith.constant 0 : index
    %c0_2 = arith.constant 0 : index
    %5 = vector.load %arg2[%c0_1, %c0_2] : memref<16x128xf32, #tpu.memory_space<vmem>>, vector<16x128xf32>
    tpu.vector_store %arg2[%c0_1, %c0_2], %4 {strides = array<i32>} : memref<16x128xf32, #tpu.memory_space<vmem>>, vector<16x128xf32>,
    return
  }
  func.func @transform_0(%arg0: i32) -> (i32, i32) {
    %c0_i32 = arith.constant 0 : i32
    %c0_i32_0 = arith.constant 0 : i32
    return %arg0, %c0_i32 : i32, i32
  }
  func.func @transform_1(%arg0: i32) -> (i32, i32) {
    %c0_i32 = arith.constant 0 : i32
    %c0_i32_0 = arith.constant 0 : i32
    return %arg0, %c0_i32 : i32, i32
  }
}

</mosaic_0001>

<bundles_post_ra>
// kernel: tpu_custom_call.1
= control target key start
LH: loop header
LB: loop body
LE: loop exit
PB: predicated region body
PF: predicated region fallthrough
CT: control target
= control target key end

     0   :  { %6 = vsyncpa [#allocation3], 0  ;;  %s152_s0 = inlined_call_operand.hbm [shape: f32[16,128], index: 0, kind: input, shape index: {}]   ;;  %s153_s1 = inlined_call_operand.hbm [shape: f32[16,128], index: 1, kind: output, shape index: {}]  }
   0x1   :  { %7 = vsyncpa [#allocation4], 0  ;;  %s108_s6 = smov [#allocation2]   ;;  %s60_s10 = scalar_lea.hbm %s152_s0, 256 }
   0x2   :  { %s13_s7 = sshll.u32 %s108_s6, 4  ;;  %p61_p0 = scmp.ne.s32.totalorder %s152_s0, %s60_s10  ;;  %s14_s7 = int_to_ptr.vmem [resolvable:$true] %s13_s7 }
   0x3   :  { %p64_p1 = scmp.lt.u32.totalorder %s60_s10, %s152_s0 }
   0x5   :  { %p66_p2 = pnand %p64_p1, %p61_p0 }
   0x7   :  { %69 = shalt.err (!%p66_p2)
}
   0x8   :  { %s70_s15 = scalar_lea.vmem %s14_s7, 256  ;;  %p75_p4 = scmp.lt.s32.totalorder %s14_s7, %s14_s7 }
   0x9   :  { %p71_p3 = scmp.ne.s32.totalorder %s14_s7, %s70_s15  ;;  %p76_p5 = scmp.lt.s32.totalorder %s70_s15, %s70_s15 }
   0xb   :  { %p77_p6 = por %p76_p5, %p75_p4 }
   0xd   :  { %p78_p7 = pnand %p77_p6, %p71_p3 }
   0xf   :  { %81 = shalt.err (!%p78_p7)
}
  0x10   :  { %s109_s16 = smov 128   ;;  %s110_s17 = smov 8  }
  0x11   :  { %19 = dma.hbm_to_vmem [thread:$0]  %s152_s0, 256, %s14_s7, [#allocation3], %s109_s16, %s109_s16, %s110_s17  }
  0x12   :  { %104 = dma.done.wait [#allocation3], 256  }
  0x13   :  { %105 = vsyncadd [#allocation3], 4294967040  ;;  %v23_v0 = vld [vmem:[#allocation2] sm:$0xff]  ;;  %v24_v1 = vld [vmem:[#allocation2 + $0x8] sm:$0xff]  ;;  %s111_s20 = smov [#allocation5]  }
  0x14   :  { %v25_v2 = vmul.f32 %v23_v0, %v23_v0  ;;  %v26_v3 = vmul.f32 %v24_v1, %v24_v1  ;;  %s40_s21 = sshll.u32 %s111_s20, 4  ;;  %s41_s21 = int_to_ptr.vmem [resolvable:$true] %s40_s21 }
  0x15   :  { %s82_s0 = scalar_lea.vmem %s41_s21, 256  ;;  %p87_p9 = scmp.lt.s32.totalorder %s41_s21, %s41_s21 }
  0x16   :  { %v27_v4 = vadd.f32 1.0, %v25_v2  ;;  %v28_v5 = vadd.f32 1.0, %v26_v3  ;;  %p83_p8 = scmp.ne.s32.totalorder %s41_s21, %s82_s0  ;;  %p88_p10 = scmp.lt.s32.totalorder %s82_s0, %s82_s0 }
  0x18   :  { %56 = vrcp.f32 %v27_v4  ;;  %p89_p11 = por %p88_p10, %p87_p9 }
  0x19   :  { %58 = vrcp.f32 %v28_v5 }
  0x1a   :  { %p90_p12 = pnand %p89_p11, %p83_p8 }
  0x22   :  { %v57_v6 = vpop.eup %56 }
  0x23   :  { %v59_v7 = vpop.eup %58  ;;  %v30_v8 = vmul.f32 %v57_v6, %v25_v2 }
  0x24   :  { %v32_v9 = vmul.f32 %v59_v7, %v26_v3 }
  0x25   :  { %33 = vst [vmem:[#allocation5] sm:$0xff] %v30_v8 }
  0x26   :  { %34 = vst [vmem:[#allocation5 + $0x8] sm:$0xff] %v32_v9 }
  0x27   :  { %93 = shalt.err (!%p90_p12)
}
  0x28   :  { %s94_s24 = scalar_lea.hbm %s153_s1, 256 }
  0x29   :  { %p95_p13 = scmp.ne.s32.totalorder %s153_s1, %s94_s24  ;;  %p98_p0 = scmp.lt.u32.totalorder %s94_s24, %s153_s1 }
  0x2b   :  { %p100_p1 = pnand %p98_p0, %p95_p13 }
  0x2d   :  { %103 = shalt.err (!%p100_p1)
}
  0x2e   :  { %46 = dma.vmem_to_hbm [thread:$0]  %s41_s21, 256, %s153_s1, [#allocation4], %s109_s16, %s109_s16, %s110_s17  }
  0x2f   :  { %106 = dma.done.wait [#allocation4], 256  }
  0x30   :  { %107 = vsyncadd [#allocation4], 4294967040 }
  0x31   :  { %50 = vsyncpa [#allocation3], 1 }
  0x32   :  { %51 = vsyncpa [#allocation4], 1 }

</bundles_post_ra>
